<compile_context>
chip_gen: v6e
topology: v6e:2x2x1
jax: 0.10.0
libtpu: 0.0.40
codegen_flags: <defaults>
</compile_context>

<pallas_src>
import functools

import jax
import jax.numpy as jnp
from jax.experimental import pallas as pl
from jax.experimental.pallas import tpu as pltpu


# ------------------------------ Pallas kernel ------------------------------

def _resblock_kernel(x_ref, mask_ref, w1_ref, b1_ref, w2_ref, b2_ref, o_ref, *,
                     offsets, base, m, cout, lp):
    """Fused mfm(conv1) -> mfm(conv2) -> + residual for one whole image.

    x_ref:  (1, Cin, Lp)  bf16, padded image flattened row-major (spatial in lanes)
    o_ref:  (1, Cout, m)  output, m = H*Wp (2 garbage lanes per image row)
    """
    x = x_ref[0]                                                   # (Cin, Lp) bf16

    def mfm_conv(src, w_ref, b_ref):
        # Nine 3x3 taps = static lane slices of the padded frame, stacked along
        # sublanes into the GEMM K dimension (K = 9*Cin).  One GEMM per conv.
        xk = jnp.concatenate([src[:, d:d + m] for d in offsets], axis=0)
        y = jnp.dot(w_ref[...], xk, preferred_element_type=jnp.float32)
        y = y + b_ref[...]                                         # (2*Cout, m)
        return jnp.maximum(y[:cout], y[cout:])                     # MFM, (Cout, m) f32

    # conv1 + MFM
    h = mfm_conv(x, w1_ref, b1_ref)

    # Zero the two garbage lanes per image row, then re-embed h1 into the
    # zero-padded frame entirely on-chip (h1 never goes to HBM).
    h = (h * mask_ref[...]).astype(jnp.bfloat16)
    hp = jnp.concatenate(
        [jnp.zeros((cout, base), jnp.bfloat16),
         h,
         jnp.zeros((cout, lp - base - m), jnp.bfloat16)], axis=-1)  # (Cout, Lp)

    # conv2 + MFM + residual (residual sliced from the already-loaded input).
    z = mfm_conv(hp, w2_ref, b2_ref)                               # (Cout, m) f32
    res = x[:, base:base + m].astype(jnp.float32)                  # Cin == Cout
    o_ref[0] = (z + res).astype(o_ref.dtype)


# --------------------------------- wrapper ---------------------------------

def resblock_forward(x_nchw, w1, b1, w2, b2):
    """resblock.forward: out = mfm2(mfm1(x)) + x.  NCHW in / NCHW out.

    w1, w2: (2*Cout, Cin, 3, 3) PyTorch Conv2d layout; b1, b2: (2*Cout,).
    """
    N, C, H, W = x_nchw.shape
    cout2 = w1.shape[0]
    cout = cout2 // 2
    if cout != C:
        raise ValueError("resblock requires in_channels == out_channels")

    Wp = W + 2                        # 1 col pad each side
    Lp = (H + 3) * Wp                 # 1 row top / 2 rows bottom pad, flattened
    m = H * Wp                        # lanes per output (2 garbage cols per row)
    base = Wp + 1                     # flat index of pixel (0,0) in the padded frame
    offsets = tuple(ky * Wp + kx for ky in range(3) for kx in range(3))

    # Single pad in NCHW (no transposes), flatten spatial, cast to bf16.
    xp = jnp.pad(x_nchw.astype(jnp.bfloat16), ((0, 0), (0, 0), (1, 2), (1, 1)))
    x_flat = xp.reshape(N, C, Lp)

    # (2*Cout, Cin, 3, 3) -> (2*Cout, ky, kx, Cin) -> (2*Cout, 9*Cin), bf16.
    w1_mat = jnp.transpose(w1, (0, 2, 3, 1)).reshape(cout2, 9 * C).astype(jnp.bfloat16)
    w2_mat = jnp.transpose(w2, (0, 2, 3, 1)).reshape(cout2, 9 * cout).astype(jnp.bfloat16)
    b1_col = b1.reshape(cout2, 1).astype(jnp.float32)
    b2_col = b2.reshape(cout2, 1).astype(jnp.float32)

    # 1.0 on real pixels, 0.0 on the two garbage lanes per image row.
    mask = (jnp.arange(m, dtype=jnp.int32) % Wp < W).astype(jnp.float32).reshape(1, m)

    kernel = functools.partial(_resblock_kernel, offsets=offsets, base=base,
                               m=m, cout=cout, lp=Lp)

    out = pl.pallas_call(
        kernel,
        out_shape=jax.ShapeDtypeStruct((N, cout, m), x_nchw.dtype),
        grid=(N,),
        in_specs=[
            pl.BlockSpec((1, C, Lp), lambda n: (n, 0, 0)),         # padded image
            pl.BlockSpec((1, m), lambda n: (0, 0)),                # garbage-lane mask
            pl.BlockSpec((cout2, 9 * C), lambda n: (0, 0)),        # w1 (VMEM resident)
            pl.BlockSpec((cout2, 1), lambda n: (0, 0)),            # b1
            pl.BlockSpec((cout2, 9 * cout), lambda n: (0, 0)),     # w2
            pl.BlockSpec((cout2, 1), lambda n: (0, 0)),            # b2
        ],
        out_specs=pl.BlockSpec((1, cout, m), lambda n: (n, 0, 0)),
        compiler_params=pltpu.CompilerParams(
            dimension_semantics=("parallel",)),                    # batch across TCs
    )(x_flat, mask, w1_mat, b1_col, w2_mat, b2_col)

    # Drop the two garbage columns per image row; output is already NCHW.
    return out.reshape(N, cout, H, Wp)[:, :, :, :W]


# ---------------------------- pure-JAX reference ----------------------------

def _ref_mfm(x, w, b):
    y = jax.lax.conv_general_dilated(
        x, w, window_strides=(1, 1), padding=((1, 1), (1, 1)),
        dimension_numbers=("NCHW", "OIHW", "NCHW"))
    y = y + b[None, :, None, None]
    c = y.shape[1] // 2
    return jnp.maximum(y[:, :c], y[:, c:])


def _ref_resblock(x, w1, b1, w2, b2):
    out = _ref_mfm(x, w1, b1)
    out = _ref_mfm(out, w2, b2)
    return out + x


# ----------------------------------- main -----------------------------------

if __name__ == "__main__":
    N, C, H, W = 2, 4, 16, 16          # resblock requires in_channels == out_channels
    key = jax.random.PRNGKey(0)
    kx, k1, k2, k3, k4 = jax.random.split(key, 5)

    x = jax.random.normal(kx, (N, C, H, W), dtype=jnp.float32)
    w1 = 0.1 * jax.random.normal(k1, (2 * C, C, 3, 3), dtype=jnp.float32)
    b1 = 0.1 * jax.random.normal(k2, (2 * C,), dtype=jnp.float32)
    w2 = 0.1 * jax.random.normal(k3, (2 * C, C, 3, 3), dtype=jnp.float32)
    b2 = 0.1 * jax.random.normal(k4, (2 * C,), dtype=jnp.float32)

    fwd = jax.jit(resblock_forward)
    out = jax.block_until_ready(fwd(x, w1, b1, w2, b2))

    ref = _ref_resblock(x, w1, b1, w2, b2)
    assert out.shape == ref.shape == (N, C, H, W)
    max_err = float(jnp.max(jnp.abs(out - ref)))
    # bf16 activations/weights/intermediate/residual (f32 accumulate) vs. a
    # pure-f32 reference.
    assert jnp.allclose(out, ref, atol=5e-2, rtol=5e-2), max_err

    print("KERNEL_OK")
</pallas_src>

<mosaic_0001>
module attributes {stable_mosaic.version = 11 : i64} {
  func.func @_resblock_kernel(%arg0: i32, %arg1: memref<1x4x342xbf16, #tpu.memory_space<vmem>>, %arg2: memref<1x288xf32, #tpu.memory_space<vmem>>, %arg3: memref<8x36xbf16, #tpu.memory_space<vmem>>, %arg4: memref<8x1xf32, #tpu.memory_space<vmem>>, %arg5: memref<8x36xbf16, #tpu.memory_space<vmem>>, %arg6: memref<8x1xf32, #tpu.memory_space<vmem>>, %arg7: memref<1x4x288xf32, #tpu.memory_space<vmem>>) attributes {dimension_semantics = [#tpu.dimension_semantics<parallel>], iteration_bounds = array<i64: 2>, scalar_prefetch = 0 : i64, scratch_operands = 0 : i64, tpu.core_type = #tpu.core_type<tc>, window_params = [{transform_indices = @transform_0, window_bounds = array<i64: 1, 4, 342>}, {pipeline_mode = #tpu.pipeline_mode<synchronous>, transform_indices = @transform_1, window_bounds = array<i64: 1, 288>}, {pipeline_mode = #tpu.pipeline_mode<synchronous>, transform_indices = @transform_2, window_bounds = array<i64: 8, 36>}, {pipeline_mode = #tpu.pipeline_mode<synchronous>, transform_indices = @transform_3, window_bounds = array<i64: 8, 1>}, {pipeline_mode = #tpu.pipeline_mode<synchronous>, transform_indices = @transform_4, window_bounds = array<i64: 8, 36>}, {pipeline_mode = #tpu.pipeline_mode<synchronous>, transform_indices = @transform_5, window_bounds = array<i64: 8, 1>}, {transform_indices = @transform_6, window_bounds = array<i64: 1, 4, 288>}]} {
    %c0 = arith.constant 0 : index
    %c0_0 = arith.constant 0 : index
    %c0_1 = arith.constant 0 : index
    %0 = vector.load %arg1[%c0, %c0_0, %c0_1] : memref<1x4x342xbf16, #tpu.memory_space<vmem>>, vector<1x4x342xbf16>
    %1 = vector.shape_cast %0 : vector<1x4x342xbf16> to vector<4x342xbf16>
    %2 = vector.extract_strided_slice %1 {offsets = [0, 0], sizes = [4, 288], strides = [1, 1]} : vector<4x342xbf16> to vector<4x288xbf16>
    %3 = vector.extract_strided_slice %1 {offsets = [0, 1], sizes = [4, 288], strides = [1, 1]} : vector<4x342xbf16> to vector<4x288xbf16>
    %4 = vector.extract_strided_slice %1 {offsets = [0, 2], sizes = [4, 288], strides = [1, 1]} : vector<4x342xbf16> to vector<4x288xbf16>
    %5 = vector.extract_strided_slice %1 {offsets = [0, 18], sizes = [4, 288], strides = [1, 1]} : vector<4x342xbf16> to vector<4x288xbf16>
    %6 = vector.extract_strided_slice %1 {offsets = [0, 19], sizes = [4, 288], strides = [1, 1]} : vector<4x342xbf16> to vector<4x288xbf16>
    %7 = vector.extract_strided_slice %1 {offsets = [0, 20], sizes = [4, 288], strides = [1, 1]} : vector<4x342xbf16> to vector<4x288xbf16>
    %8 = vector.extract_strided_slice %1 {offsets = [0, 36], sizes = [4, 288], strides = [1, 1]} : vector<4x342xbf16> to vector<4x288xbf16>
    %9 = vector.extract_strided_slice %1 {offsets = [0, 37], sizes = [4, 288], strides = [1, 1]} : vector<4x342xbf16> to vector<4x288xbf16>
    %10 = vector.extract_strided_slice %1 {offsets = [0, 38], sizes = [4, 288], strides = [1, 1]} : vector<4x342xbf16> to vector<4x288xbf16>
    %11 = tpu.concatenate %2, %3, %4, %5, %6, %7, %8, %9, %10 in 0 : vector<4x288xbf16>, vector<4x288xbf16>, vector<4x288xbf16>, vector<4x288xbf16>, vector<4x288xbf16>, vector<4x288xbf16>, vector<4x288xbf16>, vector<4x288xbf16>, vector<4x288xbf16> -> vector<36x288xbf16>
    %c0_2 = arith.constant 0 : index
    %c0_3 = arith.constant 0 : index
    %12 = vector.load %arg3[%c0_2, %c0_3] : memref<8x36xbf16, #tpu.memory_space<vmem>>, vector<8x36xbf16>
    %cst = arith.constant dense<0.000000e+00> : vector<8x288xf32>
    %13 = tpu.matmul %12, %11, %cst {dimension_numbers = #tpu.dot_dimension_numbers<[1], [0], [0], [1], [0, 0, 1, 1], [], []>} : vector<8x36xbf16>, vector<36x288xbf16>, vector<8x288xf32> -> vector<8x288xf32>
    %c0_4 = arith.constant 0 : index
    %c0_5 = arith.constant 0 : index
    %14 = vector.load %arg4[%c0_4, %c0_5] : memref<8x1xf32, #tpu.memory_space<vmem>>, vector<8x1xf32>
    %15 = vector.broadcast %14 : vector<8x1xf32> to vector<8x288xf32>
    %16 = arith.addf %13, %15 : vector<8x288xf32>
    %17 = vector.extract_strided_slice %16 {offsets = [0, 0], sizes = [4, 288], strides = [1, 1]} : vector<8x288xf32> to vector<4x288xf32>
    %18 = vector.extract_strided_slice %16 {offsets = [4, 0], sizes = [4, 288], strides = [1, 1]} : vector<8x288xf32> to vector<4x288xf32>
    %19 = arith.maximumf %17, %18 : vector<4x288xf32>
    %c0_6 = arith.constant 0 : index
    %c0_7 = arith.constant 0 : index
    %20 = vector.load %arg2[%c0_6, %c0_7] : memref<1x288xf32, #tpu.memory_space<vmem>>, vector<1x288xf32>
    %21 = vector.broadcast %20 : vector<1x288xf32> to vector<4x288xf32>
    %22 = arith.mulf %19, %21 : vector<4x288xf32>
    %23 = arith.truncf %22 : vector<4x288xf32> to vector<4x288xbf16>
    %cst_8 = arith.constant 0.000000e+00 : bf16
    %24 = vector.broadcast %cst_8 : bf16 to vector<4x19xbf16>
    %cst_9 = arith.constant 0.000000e+00 : bf16
    %25 = vector.broadcast %cst_9 : bf16 to vector<4x35xbf16>
    %26 = tpu.concatenate %24, %23, %25 in 1 : vector<4x19xbf16>, vector<4x288xbf16>, vector<4x35xbf16> -> vector<4x342xbf16>
    %27 = vector.extract_strided_slice %26 {offsets = [0, 0], sizes = [4, 288], strides = [1, 1]} : vector<4x342xbf16> to vector<4x288xbf16>
    %28 = vector.extract_strided_slice %26 {offsets = [0, 1], sizes = [4, 288], strides = [1, 1]} : vector<4x342xbf16> to vector<4x288xbf16>
    %29 = vector.extract_strided_slice %26 {offsets = [0, 2], sizes = [4, 288], strides = [1, 1]} : vector<4x342xbf16> to vector<4x288xbf16>
    %30 = vector.extract_strided_slice %26 {offsets = [0, 18], sizes = [4, 288], strides = [1, 1]} : vector<4x342xbf16> to vector<4x288xbf16>
    %31 = vector.extract_strided_slice %26 {offsets = [0, 19], sizes = [4, 288], strides = [1, 1]} : vector<4x342xbf16> to vector<4x288xbf16>
    %32 = vector.extract_strided_slice %26 {offsets = [0, 20], sizes = [4, 288], strides = [1, 1]} : vector<4x342xbf16> to vector<4x288xbf16>
    %33 = vector.extract_strided_slice %26 {offsets = [0, 36], sizes = [4, 288], strides = [1, 1]} : vector<4x342xbf16> to vector<4x288xbf16>
    %34 = vector.extract_strided_slice %26 {offsets = [0, 37], sizes = [4, 288], strides = [1, 1]} : vector<4x342xbf16> to vector<4x288xbf16>
    %35 = vector.extract_strided_slice %26 {offsets = [0, 38], sizes = [4, 288], strides = [1, 1]} : vector<4x342xbf16> to vector<4x288xbf16>
    %36 = tpu.concatenate %27, %28, %29, %30, %31, %32, %33, %34, %35 in 0 : vector<4x288xbf16>, vector<4x288xbf16>, vector<4x288xbf16>, vector<4x288xbf16>, vector<4x288xbf16>, vector<4x288xbf16>, vector<4x288xbf16>, vector<4x288xbf16>, vector<4x288xbf16> -> vector<36x288xbf16>
    %c0_10 = arith.constant 0 : index
    %c0_11 = arith.constant 0 : index
    %37 = vector.load %arg5[%c0_10, %c0_11] : memref<8x36xbf16, #tpu.memory_space<vmem>>, vector<8x36xbf16>
    %cst_12 = arith.constant dense<0.000000e+00> : vector<8x288xf32>
    %38 = tpu.matmul %37, %36, %cst_12 {dimension_numbers = #tpu.dot_dimension_numbers<[1], [0], [0], [1], [0, 0, 1, 1], [], []>} : vector<8x36xbf16>, vector<36x288xbf16>, vector<8x288xf32> -> vector<8x288xf32>
    %c0_13 = arith.constant 0 : index
    %c0_14 = arith.constant 0 : index
    %39 = vector.load %arg6[%c0_13, %c0_14] : memref<8x1xf32, #tpu.memory_space<vmem>>, vector<8x1xf32>
    %40 = vector.broadcast %39 : vector<8x1xf32> to vector<8x288xf32>
    %41 = arith.addf %38, %40 : vector<8x288xf32>
    %42 = vector.extract_strided_slice %41 {offsets = [0, 0], sizes = [4, 288], strides = [1, 1]} : vector<8x288xf32> to vector<4x288xf32>
    %43 = vector.extract_strided_slice %41 {offsets = [4, 0], sizes = [4, 288], strides = [1, 1]} : vector<8x288xf32> to vector<4x288xf32>
    %44 = arith.maximumf %42, %43 : vector<4x288xf32>
    %45 = vector.extract_strided_slice %1 {offsets = [0, 19], sizes = [4, 288], strides = [1, 1]} : vector<4x342xbf16> to vector<4x288xbf16>
    %46 = arith.extf %45 : vector<4x288xbf16> to vector<4x288xf32>
    %47 = arith.addf %44, %46 : vector<4x288xf32>
    %c0_15 = arith.constant 0 : index
    %c0_16 = arith.constant 0 : index
    %c0_17 = arith.constant 0 : index
    %48 = vector.load %arg7[%c0_15, %c0_16, %c0_17] : memref<1x4x288xf32, #tpu.memory_space<vmem>>, vector<1x4x288xf32>
    %49 = vector.shape_cast %48 : vector<1x4x288xf32> to vector<4x288xf32>
    %50 = vector.shape_cast %47 : vector<4x288xf32> to vector<1x4x288xf32>
    tpu.vector_store %arg7[%c0_15, %c0_16, %c0_17], %50 {strides = array<i32>} : memref<1x4x288xf32, #tpu.memory_space<vmem>>, vector<1x4x288xf32>,
    return
  }
  func.func @transform_0(%arg0: i32) -> (i32, i32, i32) {
    %c0_i32 = arith.constant 0 : i32
    %c0_i32_0 = arith.constant 0 : i32
    %c0_i32_1 = arith.constant 0 : i32
    return %arg0, %c0_i32, %c0_i32_0 : i32, i32, i32
  }
  func.func @transform_1(%arg0: i32) -> (i32, i32) {
    %c0_i32 = arith.constant 0 : i32
    %c0_i32_0 = arith.constant 0 : i32
    %c0_i32_1 = arith.constant 0 : i32
    return %c0_i32, %c0_i32_0 : i32, i32
  }
  func.func @transform_2(%arg0: i32) -> (i32, i32) {
    %c0_i32 = arith.constant 0 : i32
    %c0_i32_0 = arith.constant 0 : i32
    %c0_i32_1 = arith.constant 0 : i32
    return %c0_i32, %c0_i32_0 : i32, i32
  }
  func.func @transform_3(%arg0: i32) -> (i32, i32) {
    %c0_i32 = arith.constant 0 : i32
    %c0_i32_0 = arith.constant 0 : i32
    %c0_i32_1 = arith.constant 0 : i32
    return %c0_i32, %c0_i32_0 : i32, i32
  }
  func.func @transform_4(%arg0: i32) -> (i32, i32) {
    %c0_i32 = arith.constant 0 : i32
    %c0_i32_0 = arith.constant 0 : i32
    %c0_i32_1 = arith.constant 0 : i32
    return %c0_i32, %c0_i32_0 : i32, i32
  }
  func.func @transform_5(%arg0: i32) -> (i32, i32) {
    %c0_i32 = arith.constant 0 : i32
    %c0_i32_0 = arith.constant 0 : i32
    %c0_i32_1 = arith.constant 0 : i32
    return %c0_i32, %c0_i32_0 : i32, i32
  }
  func.func @transform_6(%arg0: i32) -> (i32, i32, i32) {
    %c0_i32 = arith.constant 0 : i32
    %c0_i32_0 = arith.constant 0 : i32
    %c0_i32_1 = arith.constant 0 : i32
    return %arg0, %c0_i32, %c0_i32_0 : i32, i32, i32
  }
}

</mosaic_0001>

<bundles_post_ra>
// kernel: resblock_forward.1
= control target key start
LH: loop header
LB: loop body
LE: loop exit
PB: predicated region body
PF: predicated region fallthrough
CT: control target
= control target key end

     0   :  { %s1007_s21 = smov 0   ;;  %s1254_s0 = inlined_call_operand.vmem [shape: bf16[2,4,342], index: 0, kind: input, shape index: {}]   ;;  %s1255_s1 = inlined_call_operand.vmem [shape: f32[1,288], index: 1, kind: input, shape index: {}]   ;;  %s1256_s2 = inlined_call_operand.vmem [shape: bf16[8,36], index: 2, kind: input, shape index: {}]   ;;  %s1257_s3 = inlined_call_operand.vmem [shape: f32[8,1], index: 3, kind: input, shape index: {}]   ;;  %s1258_s4 = inlined_call_operand.vmem [shape: bf16[8,36], index: 4, kind: input, shape index: {}]   ;;  %s1259_s5 = inlined_call_operand.vmem [shape: f32[8,1], index: 5, kind: input, shape index: {}]   ;;  %s1260_s6 = inlined_call_operand.vmem [shape: f32[2,4,288], index: 6, kind: output, shape index: {}]  }
   0x1 LB: > { %s876_s22 = sadd.s32 4294967295, %s957_s21   ;;  %p880_p0 = scmp.ge.s32.totalorder %s957_s21, 1  ;;  %s957_s21 = sphi %s1007_s21, %s16_s21  }
   0x2   : > { %p212_p1 = scmp.lt.s32.totalorder %s957_s21, 3 }
   0x4   : > { %p213_p2 = pnand %p880_p0, %p212_p1 }
   0x5   : > { %p242_p3 = scmp.lt.s32.totalorder (!%p213_p2), %s876_s22, 1  ;;  %s961_s27 = smov (!%p213_p2), 109  }
   0x6   : > { %216 = sbr.rel (%p213_p2) target bundleno = 875 (0x36b), region = 44  ;;  %s962_s28 = smov (!%p213_p2), 90  }
   0x7   : > { %s963_s29 = smov (!%p213_p2), 108   ;;  %s964_s30 = smov (!%p213_p2), 92  }
   0x8   : > { %s965_s7 = smov (!%p213_p2), 91   ;;  %s966_s8 = smov (!%p213_p2), 127  }
   0x9   : > { %s968_s9 = smov (!%p213_p2), 126   ;;  %s970_s10 = smov (!%p213_p2), 110  }
   0xa   : > { %s971_s17 = smov (!%p213_p2), 19  }
   0xb   : > { %v259_v0 = vlaneseq  ;;  %v959_v1 = vmov 1983009808   ;;  %v960_v3 = vmov 0.0   ;;  %s1262_s22 = smov (!%p242_p3, %s876_s22), 1  ;;  %vm967_vm0 = vmmov 0   ;;  %v407_v19 = vld [vmem:[%s1257_s3] sm:$0xff] }
   0xc   : > { %v257_v2 = vunpack.c.l.s4 %v959_v1  ;;  %899 = vmatprep.subr.bf16.mxu1 %v960_v3  ;;  %s919_s23 = smul.u32 6, %s1262_s22  ;;  %905 = vmatprep.mubr.msk.bf16.mxu1 %vm967_vm0, %v960_v3  ;;  %v969_v18 = vmov 0   ;;  %vm355_vm1 = vcmask 1041408   ;;  %vm352_vm2 = vcmask 736256  }
   0xd   : > { %v1018_v4 = vshrl.u32 %v259_v0, 7  ;;  %458 = vmatprep.mubr.bf16.mxu0 %v969_v18  ;;  %942 = vset.pattern.permute.xlu0 %v969_v18  ;;  %vm325_vm3 = vcmask 883712   ;;  %vm334_vm4 = vcmask 752640   ;;  %vm316_vm5 = vcmask 891904   ;;  %s920_s24 = smul.u32 12, %s1262_s22 }
   0xe   : > { %v258_v5 = vunpack.c.0.s8 %v257_v2  ;;  %s246_s26 = scalar_lea.vmem %s1254_s0, %s919_s23  ;;  %943 = vset.pattern.permute.xlu1 %v969_v18  ;;  %vm365_vm6 = vcmask 1043456   ;;  %vm343_vm7 = vcmask 744448   ;;  %vm372_vm8 = vcmask 1045504  }
   0xf   : > { %v1025_v7 = vld [vmem:[%s246_s26] sm:$0x3f]  ;;  %vm286_vm9 = vcmask 1039360   ;;  %vm297_vm10 = vcmask 1031168   ;;  %vm307_vm11 = vcmask 900096   ;;  %vm413_vm12 = vcmask 293888  }
  0x10   : > { %v261_v6 = vsub.s32 %v258_v5, %v1018_v4  ;;  %v255_v9 = vcombine.high %v1025_v7, %v1025_v7  ;;  %v271_v11 = vcombine.low %v1025_v7, %v1025_v7  ;;  %vm551_vm13 = vcmask 154624  }
  0x11   : > { %vm558_vm14 = vcmask 416768   ;;  %vm819_vm15 = vcmask 257024  }
  0x12   : > { %v1028_v8 = vrot.slane %v1025_v7, %v261_v6  ;;  %v1036_v10 = vrot.slane %v255_v9, %v261_v6  ;;  %v278_v13 = vrot.slane %v271_v11, %v261_v6 }
  0x14   : > { %310 = vrot.lane.b32.xlu1 %v1028_v8, %s961_s27  ;;  %346 = vrot.lane.b32.xlu0 %v1028_v8, %s962_s28  ;;  %v1046_v12 = vcombine.high %v1028_v8, %v1028_v8  ;;  %v279_v14 = vcombine.high %v278_v13, %v278_v13  ;;  %v289_v15 = vcombine.low %v1028_v8, %v1028_v8 }
  0x15   : > { %v290_v16 = vcombine.low %v1036_v10, %v1036_v10  ;;  %v300_v17 = vcombine.low %v278_v13, %v278_v13 }
  0x18   : > { %323 = vrot.lane.b32.xlu0 %v1028_v8, %s963_s29  ;;  %350 = vrot.lane.b32.xlu1 %v1036_v10, %s962_s28 }
  0x1c   : > { %348 = vrot.lane.b32.xlu0 %v1046_v12, %s962_s28  ;;  %312 = vrot.lane.b32.xlu1 %v1046_v12, %s961_s27 }
  0x20   : > { %314 = vrot.lane.b32.xlu0 %v1036_v10, %s961_s27  ;;  %321 = vrot.lane.b32.xlu1 %v279_v14, %s963_s29 }
  0x24   : > { %319 = vrot.lane.b32.xlu0 %v278_v13, %s963_s29  ;;  %330 = vrot.lane.b32.xlu1 %v1028_v8, %s964_s30 }
  0x28   : > { %328 = vrot.lane.b32.xlu1 %v289_v15, %s964_s30  ;;  %332 = vrot.lane.b32.xlu0 %v290_v16, %s964_s30 }
  0x2c   : > { %341 = vrot.lane.b32.xlu1 %v289_v15, %s965_s7  ;;  %339 = vrot.lane.b32.xlu0 %v278_v13, %s965_s7 }
  0x30   : > { %282 = vrot.lane.b32.xlu1 %v279_v14, %s966_s8  ;;  %337 = vrot.lane.b32.xlu0 %v300_v17, %s965_s7 }
  0x34   : > { %280 = vrot.lane.b32.xlu1 %v278_v13, %s966_s8  ;;  %284 = vrot.lane.b32.xlu0 %v1028_v8, %s966_s8 }
  0x38   : > { %295 = vrot.lane.b32.xlu1 %v290_v16, %s968_s9  ;;  %293 = vrot.lane.b32.xlu0 %v1028_v8, %s968_s9 }
  0x3c   : > { %303 = vrot.lane.b32.xlu1 %v278_v13, %s970_s10  ;;  %291 = vrot.lane.b32.xlu0 %v289_v15, %s968_s9 }
  0x40   : > { %301 = vrot.lane.b32.xlu1 %v300_v17, %s970_s10  ;;  %305 = vrot.lane.b32.xlu0 %v289_v15, %s970_s10 }
  0x44   : > { %410 = vperm.xlu0 %942, %v407_v19  }
  0x86   : > { %v311_v20 = vpop.permute.xlu1 %310  ;;  %v347_v21 = vpop.permute.xlu0 %346 }
  0x8a   : > { %v324_v22 = vpop.permute.xlu0 %323  ;;  %v351_v23 = vpop.permute.xlu1 %350 }
  0x8b   : > { %v424_v24 = vsel %vm355_vm1, %v351_v23, 0 }
  0x8c   : > { %900 = vmatpush3.bf16.msra.mxu1 %v424_v24  ;;  %v523_v24 = vsub.s32 0, %v1018_v4 }
  0x8d   : > { %901 = vmatprep.subr.bf16.mxu1 %v960_v3 }
  0x8e   : > { %v349_v25 = vpop.permute.xlu0 %348  ;;  %v313_v26 = vpop.permute.xlu1 %312 }
  0x8f   : > { %v354_v27 = vsel %vm352_vm2, %v349_v25, %v351_v23  ;;  %v353_v28 = vsel %vm352_vm2, %v347_v21, %v349_v25  ;;  %v317_v50 = vsel %vm316_vm5, %v311_v20, %v313_v26 }
  0x90   : > { %883 = vmatprep.subr.msk.bf16.mxu0 %vm355_vm1, %v354_v27  ;;  %v418_v29 = vsel %vm355_vm1, %v353_v28, 0  ;;  %v527_v28 = vsub.s32 1, %v1018_v4 }
  0x91   : > { %437 = vmatpush1.bf16.msra.mxu0 %v418_v29 }
  0x92   : > { %v315_v30 = vpop.permute.xlu0 %314  ;;  %v322_v31 = vpop.permute.xlu1 %321 }
  0x93   : > { %v318_v36 = vsel %vm316_vm5, %v313_v26, %v315_v30  ;;  %v327_v37 = vsel %vm325_vm3, %v322_v31, %v324_v22  ;;  %v390_v39 = vsel %vm355_vm1, %v315_v30, %v324_v22  ;;  %v519_v30 = vld [vmem:[%s1255_s1] sm:$0x7] }
  0x94   : > { %v387_v40 = vsel %vm355_vm1, %v318_v36, %v327_v37 }
  0x96   : > { %v320_v32 = vpop.permute.xlu0 %319  ;;  %v331_v33 = vpop.permute.xlu1 %330 }
  0x97   : > { %v326_v44 = vsel %vm325_vm3, %v320_v32, %v322_v31  ;;  %v531_v32 = vsub.s32 2, %v1018_v4 }
  0x98   : > { %v384_v51 = vsel %vm355_vm1, %v317_v50, %v326_v44 }
  0x9a   : > { %v329_v34 = vpop.permute.xlu1 %328  ;;  %v333_v35 = vpop.permute.xlu0 %332 }
  0x9b   : > { %v336_v38 = vsel %vm334_vm4, %v331_v33, %v333_v35  ;;  %v396_v41 = vsel %vm365_vm6, %v390_v39, %v333_v35  ;;  %v335_v48 = vsel %vm334_vm4, %v329_v34, %v331_v33  ;;  %v524_v35 = vrot.slane %v519_v30, %v523_v24 }
  0x9c   : > { %v394_v47 = vsel %vm365_vm6, %v387_v40, %v336_v38  ;;  %v392_v55 = vsel %vm365_vm6, %v384_v51, %v335_v48  ;;  %v528_v40 = vrot.slane %v519_v30, %v527_v28 }
  0x9e   : > { %v342_v42 = vpop.permute.xlu1 %341  ;;  %v340_v43 = vpop.permute.xlu0 %339 }
  0x9f   : > { %v345_v45 = vsel %vm343_vm7, %v340_v43, %v342_v42  ;;  %v404_v46 = vsel %vm372_vm8, %v396_v41, %v342_v42 }
  0xa0   : > { %902 = vmatpush3.bf16.msra.mxu1 %v404_v46  ;;  %v401_v49 = vsel %vm372_vm8, %v394_v47, %v345_v45  ;;  %v532_v45 = vrot.slane %v519_v30, %v531_v32 }
  0xa1   : > { %438 = vmatprep.subr.bf16.mxu0 %v401_v49  ;;  %903 = vmatprep.subr.bf16.mxu1 %v960_v3 }
  0xa2   : > { %v283_v52 = vpop.permute.xlu1 %282  ;;  %v338_v53 = vpop.permute.xlu0 %337 }
  0xa3   : > { %v344_v54 = vsel %vm343_vm7, %v338_v53, %v340_v43 }
  0xa4   : > { %v398_v56 = vsel %vm372_vm8, %v392_v55, %v344_v54 }
  0xa5   : > { %439 = vmatpush1.bf16.msra.mxu0 %v398_v56 }
  0xa6   : > { %v281_v57 = vpop.permute.xlu1 %280  ;;  %v285_v58 = vpop.permute.xlu0 %284 }
  0xa7   : > { %v288_v61 = vsel %vm286_vm9, %v283_v52, %v285_v58  ;;  %v287_v0 = vsel %vm286_vm9, %v281_v57, %v283_v52  ;;  %v364_v6 = vsel %vm355_vm1, %v1036_v10, %v285_v58 }
  0xa8   : > { %v361_v5 = vsel %vm355_vm1, %v1046_v12, %v288_v61  ;;  %v358_v9 = vsel %vm355_vm1, %v1028_v8, %v287_v0  ;;  %v406_v8 = vld [vmem:[%s1256_s2] sm:$0xf] }
  0xaa   : > { %v296_v59 = vpop.permute.xlu1 %295  ;;  %v294_v60 = vpop.permute.xlu0 %293 }
  0xab   : > { %v299_v1 = vsel %vm297_vm10, %v294_v60, %v296_v59  ;;  %v371_v11 = vsel %vm365_vm6, %v364_v6, %v296_v59 }
  0xac   : > { %v369_v15 = vsel %vm365_vm6, %v361_v5, %v299_v1 }
  0xae   : > { %v304_v62 = vpop.permute.xlu1 %303  ;;  %v292_v63 = vpop.permute.xlu0 %291 }
  0xaf   : > { %v298_v2 = vsel %vm297_vm10, %v292_v63, %v294_v60 }
  0xb0   : > { %v367_v12 = vsel %vm365_vm6, %v358_v9, %v298_v2  ;;  %v794_v2 = vunpack.c.l.bf16 %v1025_v7  ;;  %v683_v9 = vld [vmem:[%s1259_s5] sm:$0xff] }
  0xb2   : > { %v302_v13 = vpop.permute.xlu1 %301  ;;  %v306_v14 = vpop.permute.xlu0 %305  ;;  %v798_v5 = vcombine.high %v794_v2, %v794_v2 }
  0xb3   : > { %v308_v16 = vsel %vm307_vm11, %v302_v13, %v304_v62  ;;  %v309_v17 = vsel %vm307_vm11, %v304_v62, %v306_v14  ;;  %v380_v19 = vsel %vm372_vm8, %v371_v11, %v306_v14  ;;  %v795_v11 = vunpack.c.h.bf16 %v1025_v7 }
  0xb4   : > { %904 = vmatpush3.bf16.msra.mxu1 %v380_v19  ;;  %v377_v10 = vsel %vm372_vm8, %v369_v15, %v309_v17  ;;  %v374_v20 = vsel %vm372_vm8, %v367_v12, %v308_v16  ;;  %v944_v6 = vpack.i.bf16 %v798_v5, %v794_v2  ;;  %v682_v5 = vld [vmem:[%s1258_s4] sm:$0xf] }
  0xb5   : > { %440 = vmatprep.subr.bf16.mxu0 %v377_v10  ;;  %909 = vmatprep.subr.bf16.mxu1 %v960_v3 }
  0xb6   : > { %441 = vmatpush1.bf16.msra.mxu0 %v374_v20 }
  0xb7   : > { %906 = vmatmul.mubr.msk.bf16.vlgmr.msra.gmra.mxu1 %vm413_vm12, %v406_v8 }
  0xb8   : > { %915 = vmatprep.mubr.msk.bf16.mxu1 %vm967_vm0, %v960_v3 }
  0xb9   : > { %884 = vmatmul.mubr.msk.bf16.vlgmr.msra.gmra.mxu0 %vm413_vm12, %v406_v8 }
  0xba   : > { %733 = vmatprep.mubr.bf16.mxu0 %v969_v18 }
  0xbf   : > { %v411_v21 = vpop.permute.xlu0 %410 }
 0x177   : > { %v501_v22 = vpop.f32.mrf.mxu1 }
 0x178   : > { %v502_v23 = vadd.f32 %v501_v22, %v411_v21 }
 0x179   : > { %v460_v25 = vpop.f32.mrf.mxu0  ;;  %v907_v26 = vpop.f32.mrf.mxu1 }
 0x17a   : > { %v461_v27 = vadd.f32 %v460_v25, %v411_v21  ;;  %v512_v33 = vrot.slane %v502_v23, 4 }
 0x17b   : > { %v462_v29 = vpop.f32.mrf.mxu0  ;;  %v504_v31 = vpop.f32.mrf.mxu1 }
 0x17c   : > { %v510_v18 = vrot.slane %v461_v27, 4  ;;  %v463_v34 = vadd.f32 %v462_v29, %v411_v21  ;;  %v518_v42 = vmax.f32 %v502_v23, %v512_v33 }
 0x17d   : > { %v464_v36 = vpop.f32.mrf.mxu0  ;;  %v908_v37 = vpop.f32.mrf.mxu1 }
 0x17e   : > { %v516_v38 = vmax.f32 %v461_v27, %v510_v18  ;;  %v511_v39 = vrot.slane %v463_v34, 4  ;;  %v538_v4 = vmul.f32 %v532_v45, %v518_v42 }
 0x17f   : > { %v465_v41 = vpop.f32.mrf.mxu0 }
 0x180   : > { %v517_v43 = vmax.f32 %v463_v34, %v511_v39  ;;  %v536_v44 = vmul.f32 %v524_v35, %v516_v38  ;;  %v541_v49 = vpack.c.bf16 %v538_v4, %v538_v4 }
 0x182   : > { %v539_v46 = vpack.c.bf16 %v536_v44, %v536_v44  ;;  %v537_v47 = vmul.f32 %v528_v40, %v517_v43 }
 0x184   : > { %545 = vrot.lane.b32.xlu0 %v539_v46, %s971_s17  ;;  %v540_v48 = vpack.c.bf16 %v537_v47, %v537_v47 }
 0x186   : > { %547 = vrot.lane.b32.xlu1 %v540_v48, %s971_s17 }
 0x18a   : > { %549 = vrot.lane.b32.xlu1 %v541_v49, %s971_s17 }
 0x1f6   : > { %v546_v50 = vpop.permute.xlu0 %545 }
 0x1f7   : > { %v1144_v51 = vsel %vm551_vm13, 0, %v546_v50 }
 0x1f8   : > { %v548_v52 = vpop.permute.xlu1 %547  ;;  %596 = vrot.lane.b32.xlu0 %v1144_v51, %s961_s27  ;;  %628 = vrot.lane.b32.xlu1 %v1144_v51, %s962_s28  ;;  %v563_v53 = vrot.slane %v1144_v51, 6  ;;  %v585_v55 = vrot.slane %v1144_v51, 2  ;;  %v574_v57 = vrot.slane %v1144_v51, 4 }
 0x1f9   : > { %v1152_v54 = vsel %vm551_vm13, %v546_v50, %v548_v52 }
 0x1fa   : > { %v564_v60 = vrot.slane %v1152_v54, 6  ;;  %v586_v61 = vrot.slane %v1152_v54, 2  ;;  %v575_v62 = vrot.slane %v1152_v54, 4 }
 0x1fc   : > { %604 = vrot.lane.b32.xlu1 %v563_v53, %s963_s29  ;;  %630 = vrot.lane.b32.xlu0 %v1152_v54, %s962_s28  ;;  %v550_v56 = vpop.permute.xlu1 %549 }
 0x1fd   : > { %v553_v58 = vsel %vm551_vm13, %v548_v52, %v550_v56 }
 0x1fe   : > { %v1165_v59 = vsel %vm558_vm14, %v553_v58, 0 }
 0x1ff   : > { %v565_v63 = vrot.slane %v1165_v59, 6  ;;  %v576_v0 = vrot.slane %v1165_v59, 4  ;;  %v587_v1 = vrot.slane %v1165_v59, 2 }
 0x200   : > { %620 = vrot.lane.b32.xlu1 %v585_v55, %s965_s7  ;;  %598 = vrot.lane.b32.xlu0 %v1152_v54, %s961_s27 }
 0x204   : > { %577 = vrot.lane.b32.xlu1 %v574_v57, %s968_s9  ;;  %612 = vrot.lane.b32.xlu0 %v574_v57, %s964_s30 }
 0x208   : > { %632 = vrot.lane.b32.xlu1 %v1165_v59, %s962_s28  ;;  %566 = vrot.lane.b32.xlu0 %v563_v53, %s966_s8 }
 0x20c   : > { %600 = vrot.lane.b32.xlu1 %v1165_v59, %s961_s27  ;;  %606 = vrot.lane.b32.xlu0 %v564_v60, %s963_s29 }
 0x210   : > { %622 = vrot.lane.b32.xlu1 %v586_v61, %s965_s7  ;;  %614 = vrot.lane.b32.xlu0 %v575_v62, %s964_s30 }
 0x214   : > { %579 = vrot.lane.b32.xlu1 %v575_v62, %s968_s9  ;;  %568 = vrot.lane.b32.xlu0 %v564_v60, %s966_s8 }
 0x218   : > { %608 = vrot.lane.b32.xlu1 %v565_v63, %s963_s29  ;;  %590 = vrot.lane.b32.xlu0 %v586_v61, %s970_s10 }
 0x21c   : > { %616 = vrot.lane.b32.xlu1 %v576_v0, %s964_s30  ;;  %624 = vrot.lane.b32.xlu0 %v587_v1, %s965_s7 }
 0x220   : > { %570 = vrot.lane.b32.xlu1 %v565_v63, %s966_s8  ;;  %581 = vrot.lane.b32.xlu0 %v576_v0, %s968_s9 }
 0x224   : > { %592 = vrot.lane.b32.xlu1 %v587_v1, %s970_s10  ;;  %588 = vrot.lane.b32.xlu0 %v585_v55, %s970_s10 }
 0x228   : > { %686 = vperm.xlu1 %943, %v683_v9   ;;  %945 = vrot.lane.b32.xlu0 %v944_v6, %s961_s27 }
 0x22c   : > { %803 = vrot.lane.b32.xlu1 %v795_v11, %s961_s27  ;;  %s251_s27 = scalar_lea.vmem %s1260_s6, %s920_s24 }
 0x26a   : > { %v597_v13 = vpop.permute.xlu0 %596  ;;  %v629_v14 = vpop.permute.xlu1 %628 }
 0x26e   : > { %v605_v15 = vpop.permute.xlu1 %604  ;;  %v631_v16 = vpop.permute.xlu0 %630 }
 0x26f   : > { %v634_v20 = vsel %vm352_vm2, %v629_v14, %v631_v16 }
 0x270   : > { %v693_v7 = vsel %vm355_vm1, %v634_v20, 0 }
 0x272   : > { %v621_v17 = vpop.permute.xlu1 %620  ;;  %v599_v19 = vpop.permute.xlu0 %598 }
 0x273   : > { %v602_v18 = vsel %vm316_vm5, %v597_v13, %v599_v19 }
 0x276   : > { %v578_v12 = vpop.permute.xlu1 %577  ;;  %v613_v10 = vpop.permute.xlu0 %612 }
 0x27a   : > { %v633_v8 = vpop.permute.xlu1 %632  ;;  %v567_v21 = vpop.permute.xlu0 %566 }
 0x27b   : > { %v635_v22 = vsel %vm352_vm2, %v631_v16, %v633_v8  ;;  %v699_v23 = vsel %vm355_vm1, %v633_v8, 0 }
 0x27c   : > { %886 = vmatprep.subr.msk.bf16.mxu0 %vm355_vm1, %v635_v22  ;;  %910 = vmatpush3.bf16.msra.mxu1 %v699_v23 }
 0x27d   : > { %712 = vmatpush1.bf16.msra.mxu0 %v693_v7  ;;  %911 = vmatprep.subr.bf16.mxu1 %v960_v3 }
 0x27e   : > { %v601_v24 = vpop.permute.xlu1 %600  ;;  %v607_v25 = vpop.permute.xlu0 %606 }
 0x27f   : > { %v610_v30 = vsel %vm325_vm3, %v605_v15, %v607_v25  ;;  %v603_v36 = vsel %vm316_vm5, %v599_v19, %v601_v24 }
 0x280   : > { %v660_v35 = vsel %vm355_vm1, %v602_v18, %v610_v30 }
 0x282   : > { %v623_v26 = vpop.permute.xlu1 %622  ;;  %v615_v27 = vpop.permute.xlu0 %614 }
 0x283   : > { %v618_v33 = vsel %vm334_vm4, %v613_v10, %v615_v27  ;;  %v626_v37 = vsel %vm343_vm7, %v621_v17, %v623_v26 }
 0x284   : > { %v668_v38 = vsel %vm365_vm6, %v660_v35, %v618_v33 }
 0x285   : > { %v674_v52 = vsel %vm372_vm8, %v668_v38, %v626_v37 }
 0x286   : > { %v580_v28 = vpop.permute.xlu1 %579  ;;  %v569_v29 = vpop.permute.xlu0 %568 }
 0x287   : > { %v572_v46 = vsel %vm286_vm9, %v567_v21, %v569_v29  ;;  %v583_v53 = vsel %vm297_vm10, %v578_v12, %v580_v28 }
 0x288   : > { %v637_v55 = vsel %vm355_vm1, %v1144_v51, %v572_v46 }
 0x289   : > { %v644_v63 = vsel %vm365_vm6, %v637_v55, %v583_v53 }
 0x28a   : > { %v609_v31 = vpop.permute.xlu1 %608  ;;  %v591_v32 = vpop.permute.xlu0 %590 }
 0x28b   : > { %v611_v34 = vsel %vm325_vm3, %v607_v25, %v609_v31  ;;  %v666_v39 = vsel %vm355_vm1, %v601_v24, %v609_v31 }
 0x28c   : > { %v663_v42 = vsel %vm355_vm1, %v603_v36, %v611_v34 }
 0x28e   : > { %v617_v40 = vpop.permute.xlu1 %616  ;;  %v625_v41 = vpop.permute.xlu0 %624 }
 0x28f   : > { %v619_v43 = vsel %vm334_vm4, %v615_v27, %v617_v40  ;;  %v672_v44 = vsel %vm365_vm6, %v666_v39, %v617_v40  ;;  %v627_v45 = vsel %vm343_vm7, %v623_v26, %v625_v41 }
 0x290   : > { %v680_v47 = vsel %vm372_vm8, %v672_v44, %v625_v41  ;;  %v670_v48 = vsel %vm365_vm6, %v663_v42, %v619_v43 }
 0x291   : > { %912 = vmatpush3.bf16.msra.mxu1 %v680_v47  ;;  %v677_v4 = vsel %vm372_vm8, %v670_v48, %v627_v45 }
 0x292   : > { %v571_v49 = vpop.permute.xlu1 %570  ;;  %713 = vmatprep.subr.bf16.mxu0 %v677_v4  ;;  %v582_v50 = vpop.permute.xlu0 %581  ;;  %913 = vmatprep.subr.bf16.mxu1 %v960_v3 }
 0x293   : > { %v573_v56 = vsel %vm286_vm9, %v569_v29, %v571_v49  ;;  %v642_v57 = vsel %vm355_vm1, %v1165_v59, %v571_v49  ;;  %714 = vmatpush1.bf16.msra.mxu0 %v674_v52  ;;  %v584_v60 = vsel %vm297_vm10, %v580_v28, %v582_v50 }
 0x294   : > { %v640_v58 = vsel %vm355_vm1, %v1152_v54, %v573_v56  ;;  %v648_v61 = vsel %vm365_vm6, %v642_v57, %v582_v50 }
 0x295   : > { %v646_v59 = vsel %vm365_vm6, %v640_v58, %v584_v60 }
 0x296   : > { %v593_v62 = vpop.permute.xlu1 %592  ;;  %v589_v3 = vpop.permute.xlu0 %588 }
 0x297   : > { %v595_v0 = vsel %vm307_vm11, %v591_v32, %v593_v62  ;;  %v656_v51 = vsel %vm372_vm8, %v648_v61, %v593_v62  ;;  %v594_v1 = vsel %vm307_vm11, %v589_v3, %v591_v32 }
 0x298   : > { %914 = vmatpush3.bf16.msra.mxu1 %v656_v51  ;;  %v653_v54 = vsel %vm372_vm8, %v646_v59, %v595_v0  ;;  %v650_v2 = vsel %vm372_vm8, %v644_v63, %v594_v1 }
 0x299   : > { %715 = vmatprep.subr.bf16.mxu0 %v653_v54 }
 0x29a   : > { %716 = vmatpush1.bf16.msra.mxu0 %v650_v2  ;;  %v946_v13 = vpop.permute.xlu0 %945 }
 0x29b   : > { %916 = vmatmul.mubr.msk.bf16.vlgmr.msra.gmra.mxu1 %vm413_vm12, %v682_v5  ;;  %v948_v20 = vunpack.i.h.bf16 %v946_v13  ;;  %v947_v8 = vunpack.i.l.bf16 %v946_v13 }
 0x29d   : > { %887 = vmatmul.mubr.msk.bf16.vlgmr.msra.gmra.mxu0 %vm413_vm12, %v682_v5  ;;  %v806_v28 = vsel %vm316_vm5, %v947_v8, %v948_v20 }
 0x2a3   : > { %v687_v6 = vpop.permute.xlu1 %686 }
 0x2a7   : > { %v804_v17 = vpop.permute.xlu1 %803 }
 0x2a8   : > { %v807_v29 = vsel %vm316_vm5, %v948_v20, %v804_v17 }
 0x35b   : > { %v776_v9 = vpop.f32.mrf.mxu1 }
 0x35c   : > { %v777_v11 = vadd.f32 %v776_v9, %v687_v6 }
 0x35d   : > { %v735_v14 = vpop.f32.mrf.mxu0  ;;  %v917_v15 = vpop.f32.mrf.mxu1 }
 0x35e   : > { %v736_v16 = vadd.f32 %v735_v14, %v687_v6  ;;  %v787_v19 = vrot.slane %v777_v11, 4 }
 0x35f   : > { %v737_v12 = vpop.f32.mrf.mxu0  ;;  %v779_v10 = vpop.f32.mrf.mxu1 }
 0x360   : > { %v785_v21 = vrot.slane %v736_v16, 4  ;;  %v738_v22 = vadd.f32 %v737_v12, %v687_v6  ;;  %v793_v23 = vmax.f32 %v777_v11, %v787_v19 }
 0x361   : > { %v739_v7 = vpop.f32.mrf.mxu0  ;;  %v918_v24 = vpop.f32.mrf.mxu1 }
 0x362   : > { %v791_v25 = vmax.f32 %v736_v16, %v785_v21  ;;  %v786_v26 = vrot.slane %v738_v22, 4  ;;  %v813_v27 = vadd.f32 %v804_v17, %v793_v23 }
 0x363   : > { %v740_v30 = vpop.f32.mrf.mxu0 }
 0x364   : > { %v792_v31 = vmax.f32 %v738_v22, %v786_v26  ;;  %820 = vst.msk [vmem:[%s251_s27 + $0x8] sm:$0xf] %vm819_vm15, %v813_v27  ;;  %v811_v32 = vadd.f32 %v806_v28, %v791_v25 }
 0x366   : > { %v812_v33 = vadd.f32 %v807_v29, %v792_v31 }
 0x368   : > { %v816_v18 = vcombine.low %v811_v32, %v812_v33 }
 0x36a   : > { %818 = vst [vmem:[%s251_s27] sm:$0xff] %v816_v18 }
 0x36b PF: > { %s16_s21 = sadd.s32 1, %s957_s21  }
 0x36c   : > { %p13_p4 = scmp.ge.s32.totalorder %s16_s21, 4  }
 0x36e   :  { %15 = sbr.rel (!%p13_p4) target bundleno = 1 (0x1), region = 74 }

</bundles_post_ra>
